<compile_context>
chip_gen: v5e
topology: v5e:2x2
jax: 0.10.0
libtpu: 0.0.40
codegen_flags: <defaults>
</compile_context>

<pallas_src>
import functools

import jax
import jax.numpy as jnp
import numpy as np
from jax.experimental import pallas as pl
from jax.experimental.pallas import tpu as pltpu

C_IN = 4
C_OUT = 4
KH = KW = 3


def fused_conv_kernel(x_ref, wt_ref, bf_ref, mask_ref, o_ref, *, nb, W, HW):
    """One grid step = `nb` images.

    x_ref   : (nb, C_IN, HW)       flattened images, lane-dense
    wt_ref  : (9, 3*C_OUT, C_IN)   per-tap fused weights (rows: conv1|conv2|conv3)
    bf_ref  : (3*C_OUT, 1)         fused biases
    mask_ref: (9, C_IN, HW)        0/1 border masks (row & col conditions merged)
    o_ref   : (nb, C_OUT, HW)
    """
    bf = bf_ref[...]  # (12, 1): broadcasts along lanes

    for i in range(nb):
        x_i = x_ref[i]  # (C_IN, HW)

        acc = None
        for k in range(KH * KW):
            dh = k // KW - 1
            dw = k % KW - 1
            s = dh * W + dw  # flat source offset of this tap
            if s == 0:
                # Center tap: no shift, mask is all-ones.
                y = x_i
            else:
                # window[ci, p] = x[ci, p + s] where the source pixel is
                # inside the image, else 0 (the zero padding).  pltpu.roll
                # uses the otherwise-idle XLU; the precomputed 0/1 mask also
                # zeroes the wrapped-around lanes, so one multiply suffices.
                y = pltpu.roll(x_i, shift=(-s) % HW, axis=1) * mask_ref[k]
            d = jnp.dot(wt_ref[k], y, preferred_element_type=jnp.float32)
            acc = d if acc is None else acc + d

        r = acc + bf  # (3*C_OUT, HW)
        c1 = r[0:C_OUT]
        c2 = r[C_OUT:2 * C_OUT]
        c3 = r[2 * C_OUT:3 * C_OUT]

        out = (jnp.maximum(c1 + c1, 0.0)
               + jnp.maximum(c1 + c2, 0.0)
               + jnp.maximum(c2 + c3, 0.0))
        o_ref[i] = out.astype(o_ref.dtype)


def fused_model(x, w1, b1, w2, b2, w3, b3, *, images_per_block=None):
    """x: (N, C_IN, H, W) f32 NCHW -> (N, C_OUT, H, W) f32."""
    N, C, H, W = x.shape
    assert C == C_IN
    HW = H * W

    if images_per_block is None:
        # Keep >= 2 grid steps whenever N >= 2 so dimension_semantics can
        # shard across both v7x TensorCores, while batching several images
        # per step for larger N to amortize per-step overhead / DMA setup.
        images_per_block = max(1, min(8, N // 2))
    nb = max(1, min(images_per_block, N))
    while N % nb:
        nb -= 1

    # Lane-dense view of the input (free reshape: contiguous memory).
    x_flat = x.reshape(N, C_IN, HW)

    # Per-tap fused weights: wt[k, conv_idx*C_OUT + co, ci] = w[co, ci, kh, kw]
    # with k = kh*KW + kw.  Leading-axis indexing only inside the kernel.
    def tapify(w):  # (C_OUT, C_IN, KH, KW) -> (9, C_OUT, C_IN)
        return jnp.transpose(w, (2, 3, 0, 1)).reshape(KH * KW, C_OUT, C_IN)

    wt = jnp.concatenate([tapify(w1), tapify(w2), tapify(w3)], axis=1)  # (9,12,4)
    bf = jnp.concatenate([b1, b2, b3]).reshape(3 * C_OUT, 1)            # (12,1)

    # Precomputed 0/1 masks (grid-invariant input, fetched once): valid iff
    # the tap's source pixel lies inside the image.  This merges the column
    # border masks and the row / roll-wrap-around masks into one multiply.
    p = np.arange(HW)
    row, col = p // W, p % W
    masks = np.zeros((KH * KW, C_IN, HW), np.float32)
    for kh in range(KH):
        for kw in range(KW):
            dh, dw = kh - 1, kw - 1
            ok = ((row + dh >= 0) & (row + dh < H)
                  & (col + dw >= 0) & (col + dw < W))
            masks[kh * KW + kw, :, :] = ok.astype(np.float32)[None, :]
    masks = jnp.asarray(masks)

    kernel = functools.partial(fused_conv_kernel, nb=nb, W=W, HW=HW)

    grid_spec = pltpu.PrefetchScalarGridSpec(
        num_scalar_prefetch=0,
        grid=(N // nb,),
        in_specs=[
            pl.BlockSpec((nb, C_IN, HW), lambda n: (n, 0, 0)),
            # Grid-invariant weights/biases/masks: constant index maps.
            pl.BlockSpec((KH * KW, 3 * C_OUT, C_IN), lambda n: (0, 0, 0)),
            pl.BlockSpec((3 * C_OUT, 1), lambda n: (0, 0)),
            pl.BlockSpec((KH * KW, C_IN, HW), lambda n: (0, 0, 0)),
        ],
        out_specs=pl.BlockSpec((nb, C_OUT, HW), lambda n: (n, 0, 0)),
    )

    out_flat = pl.pallas_call(
        kernel,
        out_shape=jax.ShapeDtypeStruct((N, C_OUT, HW), jnp.float32),
        grid_spec=grid_spec,
        compiler_params=pltpu.CompilerParams(
            dimension_semantics=("parallel",)),
    )(x_flat, wt, bf, masks)

    return out_flat.reshape(N, C_OUT, H, W)


def _reference(x, w1, b1, w2, b2, w3, b3):
    """Plain JAX reference using lax.conv_general_dilated (NCHW / OIHW)."""
    def conv(x, w, b):
        y = jax.lax.conv_general_dilated(
            x, w, window_strides=(1, 1), padding=((1, 1), (1, 1)),
            dimension_numbers=("NCHW", "OIHW", "NCHW"))
        return y + b[None, :, None, None]
    c1 = conv(x, w1, b1)
    c2 = conv(x, w2, b2)
    c3 = conv(x, w3, b3)
    return (jnp.maximum(c1 + c1, 0.0)
            + jnp.maximum(c1 + c2, 0.0)
            + jnp.maximum(c2 + c3, 0.0))


if __name__ == "__main__":
    key = jax.random.PRNGKey(0)
    kx, k1, k2, k3, kb1, kb2, kb3 = jax.random.split(key, 7)

    N, H, W = 2, 16, 16
    x = jax.random.normal(kx, (N, C_IN, H, W), dtype=jnp.float32)

    # Deterministic Conv2d-style init: uniform(-1/sqrt(fan_in), 1/sqrt(fan_in))
    fan_in = C_IN * KH * KW
    bound = 1.0 / (fan_in ** 0.5)

    def winit(k):
        return jax.random.uniform(k, (C_OUT, C_IN, KH, KW),
                                  minval=-bound, maxval=bound,
                                  dtype=jnp.float32)

    def binit(k):
        return jax.random.uniform(k, (C_OUT,), minval=-bound, maxval=bound,
                                  dtype=jnp.float32)

    w1, w2, w3 = winit(k1), winit(k2), winit(k3)
    b1, b2, b3 = binit(kb1), binit(kb2), binit(kb3)

    out = fused_model(x, w1, b1, w2, b2, w3, b3)
    out = jax.block_until_ready(out)

    ref = _reference(x, w1, b1, w2, b2, w3, b3)
    assert out.shape == (N, C_OUT, H, W)
    assert jnp.allclose(out, ref, rtol=1e-4, atol=1e-4)

    print("KERNEL_OK")
</pallas_src>

<mosaic_0001>
module attributes {stable_mosaic.version = 11 : i64} {
  func.func @fused_conv_kernel(%arg0: i32, %arg1: memref<1x4x256xf32, #tpu.memory_space<vmem>>, %arg2: memref<9x12x4xf32, #tpu.memory_space<vmem>>, %arg3: memref<12x1xf32, #tpu.memory_space<vmem>>, %arg4: memref<9x4x256xf32, #tpu.memory_space<vmem>>, %arg5: memref<1x4x256xf32, #tpu.memory_space<vmem>>) attributes {dimension_semantics = [#tpu.dimension_semantics<parallel>], iteration_bounds = array<i64: 2>, scalar_prefetch = 0 : i64, scratch_operands = 0 : i64, tpu.core_type = #tpu.core_type<tc>, window_params = [{transform_indices = @transform_0, window_bounds = array<i64: 1, 4, 256>}, {pipeline_mode = #tpu.pipeline_mode<synchronous>, transform_indices = @transform_1, window_bounds = array<i64: 9, 12, 4>}, {pipeline_mode = #tpu.pipeline_mode<synchronous>, transform_indices = @transform_2, window_bounds = array<i64: 12, 1>}, {pipeline_mode = #tpu.pipeline_mode<synchronous>, transform_indices = @transform_3, window_bounds = array<i64: 9, 4, 256>}, {transform_indices = @transform_4, window_bounds = array<i64: 1, 4, 256>}]} {
    %c0 = arith.constant 0 : index
    %c0_0 = arith.constant 0 : index
    %0 = vector.load %arg3[%c0, %c0_0] : memref<12x1xf32, #tpu.memory_space<vmem>>, vector<12x1xf32>
    %c0_1 = arith.constant 0 : index
    %c0_2 = arith.constant 0 : index
    %c0_3 = arith.constant 0 : index
    %1 = vector.load %arg1[%c0_1, %c0_2, %c0_3] : memref<1x4x256xf32, #tpu.memory_space<vmem>>, vector<1x4x256xf32>
    %2 = vector.shape_cast %1 : vector<1x4x256xf32> to vector<4x256xf32>
    %c17_i32 = arith.constant 17 : i32
    %3 = tpu.dynamic_rotate %2 by %c17_i32 dim 1 : vector<4x256xf32>, i32 -> vector<4x256xf32>
    %c0_4 = arith.constant 0 : index
    %c0_5 = arith.constant 0 : index
    %c0_6 = arith.constant 0 : index
    %4 = vector.load %arg4[%c0_4, %c0_5, %c0_6] : memref<9x4x256xf32, #tpu.memory_space<vmem>>, vector<1x4x256xf32>
    %5 = vector.shape_cast %4 : vector<1x4x256xf32> to vector<4x256xf32>
    %6 = arith.mulf %3, %5 : vector<4x256xf32>
    %c0_7 = arith.constant 0 : index
    %c0_8 = arith.constant 0 : index
    %c0_9 = arith.constant 0 : index
    %7 = vector.load %arg2[%c0_7, %c0_8, %c0_9] : memref<9x12x4xf32, #tpu.memory_space<vmem>>, vector<1x12x4xf32>
    %8 = vector.shape_cast %7 : vector<1x12x4xf32> to vector<12x4xf32>
    %cst = arith.constant dense<0.000000e+00> : vector<12x256xf32>
    %9 = tpu.matmul %8, %6, %cst {dimension_numbers = #tpu.dot_dimension_numbers<[1], [0], [0], [1], [0, 0, 1, 1], [], []>} : vector<12x4xf32>, vector<4x256xf32>, vector<12x256xf32> -> vector<12x256xf32>
    %c16_i32 = arith.constant 16 : i32
    %10 = tpu.dynamic_rotate %2 by %c16_i32 dim 1 : vector<4x256xf32>, i32 -> vector<4x256xf32>
    %c1 = arith.constant 1 : index
    %c0_10 = arith.constant 0 : index
    %c0_11 = arith.constant 0 : index
    %11 = vector.load %arg4[%c1, %c0_10, %c0_11] : memref<9x4x256xf32, #tpu.memory_space<vmem>>, vector<1x4x256xf32>
    %12 = vector.shape_cast %11 : vector<1x4x256xf32> to vector<4x256xf32>
    %13 = arith.mulf %10, %12 : vector<4x256xf32>
    %c1_12 = arith.constant 1 : index
    %c0_13 = arith.constant 0 : index
    %c0_14 = arith.constant 0 : index
    %14 = vector.load %arg2[%c1_12, %c0_13, %c0_14] : memref<9x12x4xf32, #tpu.memory_space<vmem>>, vector<1x12x4xf32>
    %15 = vector.shape_cast %14 : vector<1x12x4xf32> to vector<12x4xf32>
    %cst_15 = arith.constant dense<0.000000e+00> : vector<12x256xf32>
    %16 = tpu.matmul %15, %13, %cst_15 {dimension_numbers = #tpu.dot_dimension_numbers<[1], [0], [0], [1], [0, 0, 1, 1], [], []>} : vector<12x4xf32>, vector<4x256xf32>, vector<12x256xf32> -> vector<12x256xf32>
    %17 = arith.addf %9, %16 : vector<12x256xf32>
    %c15_i32 = arith.constant 15 : i32
    %18 = tpu.dynamic_rotate %2 by %c15_i32 dim 1 : vector<4x256xf32>, i32 -> vector<4x256xf32>
    %c2 = arith.constant 2 : index
    %c0_16 = arith.constant 0 : index
    %c0_17 = arith.constant 0 : index
    %19 = vector.load %arg4[%c2, %c0_16, %c0_17] : memref<9x4x256xf32, #tpu.memory_space<vmem>>, vector<1x4x256xf32>
    %20 = vector.shape_cast %19 : vector<1x4x256xf32> to vector<4x256xf32>
    %21 = arith.mulf %18, %20 : vector<4x256xf32>
    %c2_18 = arith.constant 2 : index
    %c0_19 = arith.constant 0 : index
    %c0_20 = arith.constant 0 : index
    %22 = vector.load %arg2[%c2_18, %c0_19, %c0_20] : memref<9x12x4xf32, #tpu.memory_space<vmem>>, vector<1x12x4xf32>
    %23 = vector.shape_cast %22 : vector<1x12x4xf32> to vector<12x4xf32>
    %cst_21 = arith.constant dense<0.000000e+00> : vector<12x256xf32>
    %24 = tpu.matmul %23, %21, %cst_21 {dimension_numbers = #tpu.dot_dimension_numbers<[1], [0], [0], [1], [0, 0, 1, 1], [], []>} : vector<12x4xf32>, vector<4x256xf32>, vector<12x256xf32> -> vector<12x256xf32>
    %25 = arith.addf %17, %24 : vector<12x256xf32>
    %c1_i32 = arith.constant 1 : i32
    %26 = tpu.dynamic_rotate %2 by %c1_i32 dim 1 : vector<4x256xf32>, i32 -> vector<4x256xf32>
    %c3 = arith.constant 3 : index
    %c0_22 = arith.constant 0 : index
    %c0_23 = arith.constant 0 : index
    %27 = vector.load %arg4[%c3, %c0_22, %c0_23] : memref<9x4x256xf32, #tpu.memory_space<vmem>>, vector<1x4x256xf32>
    %28 = vector.shape_cast %27 : vector<1x4x256xf32> to vector<4x256xf32>
    %29 = arith.mulf %26, %28 : vector<4x256xf32>
    %c3_24 = arith.constant 3 : index
    %c0_25 = arith.constant 0 : index
    %c0_26 = arith.constant 0 : index
    %30 = vector.load %arg2[%c3_24, %c0_25, %c0_26] : memref<9x12x4xf32, #tpu.memory_space<vmem>>, vector<1x12x4xf32>
    %31 = vector.shape_cast %30 : vector<1x12x4xf32> to vector<12x4xf32>
    %cst_27 = arith.constant dense<0.000000e+00> : vector<12x256xf32>
    %32 = tpu.matmul %31, %29, %cst_27 {dimension_numbers = #tpu.dot_dimension_numbers<[1], [0], [0], [1], [0, 0, 1, 1], [], []>} : vector<12x4xf32>, vector<4x256xf32>, vector<12x256xf32> -> vector<12x256xf32>
    %33 = arith.addf %25, %32 : vector<12x256xf32>
    %c4 = arith.constant 4 : index
    %c0_28 = arith.constant 0 : index
    %c0_29 = arith.constant 0 : index
    %34 = vector.load %arg2[%c4, %c0_28, %c0_29] : memref<9x12x4xf32, #tpu.memory_space<vmem>>, vector<1x12x4xf32>
    %35 = vector.shape_cast %34 : vector<1x12x4xf32> to vector<12x4xf32>
    %cst_30 = arith.constant dense<0.000000e+00> : vector<12x256xf32>
    %36 = tpu.matmul %35, %2, %cst_30 {dimension_numbers = #tpu.dot_dimension_numbers<[1], [0], [0], [1], [0, 0, 1, 1], [], []>} : vector<12x4xf32>, vector<4x256xf32>, vector<12x256xf32> -> vector<12x256xf32>
    %37 = arith.addf %33, %36 : vector<12x256xf32>
    %c255_i32 = arith.constant 255 : i32
    %38 = tpu.dynamic_rotate %2 by %c255_i32 dim 1 : vector<4x256xf32>, i32 -> vector<4x256xf32>
    %c5 = arith.constant 5 : index
    %c0_31 = arith.constant 0 : index
    %c0_32 = arith.constant 0 : index
    %39 = vector.load %arg4[%c5, %c0_31, %c0_32] : memref<9x4x256xf32, #tpu.memory_space<vmem>>, vector<1x4x256xf32>
    %40 = vector.shape_cast %39 : vector<1x4x256xf32> to vector<4x256xf32>
    %41 = arith.mulf %38, %40 : vector<4x256xf32>
    %c5_33 = arith.constant 5 : index
    %c0_34 = arith.constant 0 : index
    %c0_35 = arith.constant 0 : index
    %42 = vector.load %arg2[%c5_33, %c0_34, %c0_35] : memref<9x12x4xf32, #tpu.memory_space<vmem>>, vector<1x12x4xf32>
    %43 = vector.shape_cast %42 : vector<1x12x4xf32> to vector<12x4xf32>
    %cst_36 = arith.constant dense<0.000000e+00> : vector<12x256xf32>
    %44 = tpu.matmul %43, %41, %cst_36 {dimension_numbers = #tpu.dot_dimension_numbers<[1], [0], [0], [1], [0, 0, 1, 1], [], []>} : vector<12x4xf32>, vector<4x256xf32>, vector<12x256xf32> -> vector<12x256xf32>
    %45 = arith.addf %37, %44 : vector<12x256xf32>
    %c241_i32 = arith.constant 241 : i32
    %46 = tpu.dynamic_rotate %2 by %c241_i32 dim 1 : vector<4x256xf32>, i32 -> vector<4x256xf32>
    %c6 = arith.constant 6 : index
    %c0_37 = arith.constant 0 : index
    %c0_38 = arith.constant 0 : index
    %47 = vector.load %arg4[%c6, %c0_37, %c0_38] : memref<9x4x256xf32, #tpu.memory_space<vmem>>, vector<1x4x256xf32>
    %48 = vector.shape_cast %47 : vector<1x4x256xf32> to vector<4x256xf32>
    %49 = arith.mulf %46, %48 : vector<4x256xf32>
    %c6_39 = arith.constant 6 : index
    %c0_40 = arith.constant 0 : index
    %c0_41 = arith.constant 0 : index
    %50 = vector.load %arg2[%c6_39, %c0_40, %c0_41] : memref<9x12x4xf32, #tpu.memory_space<vmem>>, vector<1x12x4xf32>
    %51 = vector.shape_cast %50 : vector<1x12x4xf32> to vector<12x4xf32>
    %cst_42 = arith.constant dense<0.000000e+00> : vector<12x256xf32>
    %52 = tpu.matmul %51, %49, %cst_42 {dimension_numbers = #tpu.dot_dimension_numbers<[1], [0], [0], [1], [0, 0, 1, 1], [], []>} : vector<12x4xf32>, vector<4x256xf32>, vector<12x256xf32> -> vector<12x256xf32>
    %53 = arith.addf %45, %52 : vector<12x256xf32>
    %c240_i32 = arith.constant 240 : i32
    %54 = tpu.dynamic_rotate %2 by %c240_i32 dim 1 : vector<4x256xf32>, i32 -> vector<4x256xf32>
    %c7 = arith.constant 7 : index
    %c0_43 = arith.constant 0 : index
    %c0_44 = arith.constant 0 : index
    %55 = vector.load %arg4[%c7, %c0_43, %c0_44] : memref<9x4x256xf32, #tpu.memory_space<vmem>>, vector<1x4x256xf32>
    %56 = vector.shape_cast %55 : vector<1x4x256xf32> to vector<4x256xf32>
    %57 = arith.mulf %54, %56 : vector<4x256xf32>
    %c7_45 = arith.constant 7 : index
    %c0_46 = arith.constant 0 : index
    %c0_47 = arith.constant 0 : index
    %58 = vector.load %arg2[%c7_45, %c0_46, %c0_47] : memref<9x12x4xf32, #tpu.memory_space<vmem>>, vector<1x12x4xf32>
    %59 = vector.shape_cast %58 : vector<1x12x4xf32> to vector<12x4xf32>
    %cst_48 = arith.constant dense<0.000000e+00> : vector<12x256xf32>
    %60 = tpu.matmul %59, %57, %cst_48 {dimension_numbers = #tpu.dot_dimension_numbers<[1], [0], [0], [1], [0, 0, 1, 1], [], []>} : vector<12x4xf32>, vector<4x256xf32>, vector<12x256xf32> -> vector<12x256xf32>
    %61 = arith.addf %53, %60 : vector<12x256xf32>
    %c239_i32 = arith.constant 239 : i32
    %62 = tpu.dynamic_rotate %2 by %c239_i32 dim 1 : vector<4x256xf32>, i32 -> vector<4x256xf32>
    %c8 = arith.constant 8 : index
    %c0_49 = arith.constant 0 : index
    %c0_50 = arith.constant 0 : index
    %63 = vector.load %arg4[%c8, %c0_49, %c0_50] : memref<9x4x256xf32, #tpu.memory_space<vmem>>, vector<1x4x256xf32>
    %64 = vector.shape_cast %63 : vector<1x4x256xf32> to vector<4x256xf32>
    %65 = arith.mulf %62, %64 : vector<4x256xf32>
    %c8_51 = arith.constant 8 : index
    %c0_52 = arith.constant 0 : index
    %c0_53 = arith.constant 0 : index
    %66 = vector.load %arg2[%c8_51, %c0_52, %c0_53] : memref<9x12x4xf32, #tpu.memory_space<vmem>>, vector<1x12x4xf32>
    %67 = vector.shape_cast %66 : vector<1x12x4xf32> to vector<12x4xf32>
    %cst_54 = arith.constant dense<0.000000e+00> : vector<12x256xf32>
    %68 = tpu.matmul %67, %65, %cst_54 {dimension_numbers = #tpu.dot_dimension_numbers<[1], [0], [0], [1], [0, 0, 1, 1], [], []>} : vector<12x4xf32>, vector<4x256xf32>, vector<12x256xf32> -> vector<12x256xf32>
    %69 = arith.addf %61, %68 : vector<12x256xf32>
    %70 = vector.broadcast %0 : vector<12x1xf32> to vector<12x256xf32>
    %71 = arith.addf %69, %70 : vector<12x256xf32>
    %72 = vector.extract_strided_slice %71 {offsets = [0, 0], sizes = [4, 256], strides = [1, 1]} : vector<12x256xf32> to vector<4x256xf32>
    %73 = vector.extract_strided_slice %71 {offsets = [4, 0], sizes = [4, 256], strides = [1, 1]} : vector<12x256xf32> to vector<4x256xf32>
    %74 = vector.extract_strided_slice %71 {offsets = [8, 0], sizes = [4, 256], strides = [1, 1]} : vector<12x256xf32> to vector<4x256xf32>
    %75 = arith.addf %72, %72 : vector<4x256xf32>
    %cst_55 = arith.constant 0.000000e+00 : f32
    %76 = vector.broadcast %cst_55 : f32 to vector<4x256xf32>
    %77 = arith.maximumf %75, %76 : vector<4x256xf32>
    %78 = arith.addf %72, %73 : vector<4x256xf32>
    %cst_56 = arith.constant 0.000000e+00 : f32
    %79 = vector.broadcast %cst_56 : f32 to vector<4x256xf32>
    %80 = arith.maximumf %78, %79 : vector<4x256xf32>
    %81 = arith.addf %77, %80 : vector<4x256xf32>
    %82 = arith.addf %73, %74 : vector<4x256xf32>
    %cst_57 = arith.constant 0.000000e+00 : f32
    %83 = vector.broadcast %cst_57 : f32 to vector<4x256xf32>
    %84 = arith.maximumf %82, %83 : vector<4x256xf32>
    %85 = arith.addf %81, %84 : vector<4x256xf32>
    %c0_58 = arith.constant 0 : index
    %c0_59 = arith.constant 0 : index
    %c0_60 = arith.constant 0 : index
    %86 = vector.load %arg5[%c0_58, %c0_59, %c0_60] : memref<1x4x256xf32, #tpu.memory_space<vmem>>, vector<1x4x256xf32>
    %87 = vector.shape_cast %86 : vector<1x4x256xf32> to vector<4x256xf32>
    %88 = vector.shape_cast %85 : vector<4x256xf32> to vector<1x4x256xf32>
    tpu.vector_store %arg5[%c0_58, %c0_59, %c0_60], %88 {strides = array<i32>} : memref<1x4x256xf32, #tpu.memory_space<vmem>>, vector<1x4x256xf32>,
    return
  }
  func.func @transform_0(%arg0: i32) -> (i32, i32, i32) {
    %c0_i32 = arith.constant 0 : i32
    %c0_i32_0 = arith.constant 0 : i32
    %c0_i32_1 = arith.constant 0 : i32
    return %arg0, %c0_i32, %c0_i32_0 : i32, i32, i32
  }
  func.func @transform_1(%arg0: i32) -> (i32, i32, i32) {
    %c0_i32 = arith.constant 0 : i32
    %c0_i32_0 = arith.constant 0 : i32
    %c0_i32_1 = arith.constant 0 : i32
    %c0_i32_2 = arith.constant 0 : i32
    return %c0_i32, %c0_i32_0, %c0_i32_1 : i32, i32, i32
  }
  func.func @transform_2(%arg0: i32) -> (i32, i32) {
    %c0_i32 = arith.constant 0 : i32
    %c0_i32_0 = arith.constant 0 : i32
    %c0_i32_1 = arith.constant 0 : i32
    return %c0_i32, %c0_i32_0 : i32, i32
  }
  func.func @transform_3(%arg0: i32) -> (i32, i32, i32) {
    %c0_i32 = arith.constant 0 : i32
    %c0_i32_0 = arith.constant 0 : i32
    %c0_i32_1 = arith.constant 0 : i32
    %c0_i32_2 = arith.constant 0 : i32
    return %c0_i32, %c0_i32_0, %c0_i32_1 : i32, i32, i32
  }
  func.func @transform_4(%arg0: i32) -> (i32, i32, i32) {
    %c0_i32 = arith.constant 0 : i32
    %c0_i32_0 = arith.constant 0 : i32
    %c0_i32_1 = arith.constant 0 : i32
    return %arg0, %c0_i32, %c0_i32_0 : i32, i32, i32
  }
}

</mosaic_0001>

<bundles_post_ra>
// kernel: tpu_custom_call.1
= control target key start
LH: loop header
LB: loop body
LE: loop exit
PB: predicated region body
PF: predicated region fallthrough
CT: control target
= control target key end

     0   :  { %9 = vsyncpa [#allocation3], 0  ;;  %s1627_s0 = inlined_call_operand.vmem [shape: f32[2,4,256], index: 0, kind: input, shape index: {}]   ;;  %s1628_s1 = inlined_call_operand.vmem [shape: f32[9,12,4], index: 1, kind: input, shape index: {}]   ;;  %s1629_s2 = inlined_call_operand.vmem [shape: f32[12,1], index: 2, kind: input, shape index: {}]   ;;  %s1630_s3 = inlined_call_operand.vmem [shape: f32[9,4,256], index: 3, kind: input, shape index: {}]   ;;  %s1631_s4 = inlined_call_operand.hbm [shape: f32[2,4,256], index: 4, kind: output, shape index: {}]  }
   0x1   :  { %11 = vsyncpa [#allocation3 + $0x1], 0  ;;  %s1328_s15 = smov 0   ;;  %s1330_s16 = smov 0  }
   0x2   :  { %s1332_s17 = smov 0   ;;  %s1334_s18 = smov 0  }
   0x3 LB: > { %s1349_s19 = sadd.s32 4294967295, %s1292_s18   ;;  %s1086_s20 = sadd.s32 4294967294, %s1292_s18   ;;  %s1292_s18 = sphi %s1334_s18, %s1637_s18   ;;  %s1288_s17 = sphi %s1332_s17, %s1636_s17   ;;  %s1284_s16 = sphi %s1330_s16, %s1635_s16   ;;  %s1280_s15 = sphi %s1328_s15, %s1634_s15  }
   0x4   : > { %s1353_s21 = sadd.s32 1, %s1292_s18   ;;  %s113_s22 = sadd.s32 1, %s1288_s17 }
   0x5   : > { %s110_s23 = ssub.s32 %s1292_s18, %s1353_s21  ;;  %p123_p0 = scmp.ne.s32.totalorder %s1288_s17, %s1284_s16 }
   0x6   : > { %p111_p1 = scmp.eq.s32.totalorder %s110_s23, 0  ;;  %p124_p2 = scmp.eq.s32.totalorder %s1349_s19, 1 }
   0x7   : > { %p129_p3 = scmp.ne.s32.totalorder %s1284_s16, %s1280_s15  ;;  %p130_p4 = scmp.eq.s32.totalorder %s1086_s20, 1 }
   0x8   : > { %s1364_s24 = scalar_select %p111_p1, %s1288_s17, %s113_s22  }
   0x9   : > { %p1366_p5 = por %p124_p2, %p123_p0  ;;  %p1370_p6 = por %p130_p4, %p129_p3 }
   0xa   : > { %p1089_p7 = scmp.ge.s32.totalorder %s1292_s18, 1  ;;  %p165_p8 = scmp.lt.s32.totalorder %s1292_s18, 3 }
   0xc   : > { %p166_p9 = pnand %p1089_p7, %p165_p8 }
   0xd   : > { %p191_p10 = scmp.lt.s32.totalorder (!%p166_p9), %s1349_s19, 1  ;;  %s1294_s8 = smov (!%p166_p9), 17  }
   0xe   : > { %169 = sbr.rel (%p166_p9) target bundleno = 425 (0x1a9), region = 36  ;;  %s1295_s11 = smov (!%p166_p9), 16  }
   0xf   : > { %s1296_s14 = smov (!%p166_p9), 15   ;;  %s1297_s23 = smov (!%p166_p9), 1  }
  0x10   : > { %s1298_s29 = smov (!%p166_p9), 127   ;;  %s1299_s6 = smov (!%p166_p9), 113  }
  0x11   : > { %s1300_s9 = smov (!%p166_p9), 112   ;;  %s1301_s10 = smov (!%p166_p9), 111  }
  0x12   : > { %s1176_s30 = sshll.u32 (!%p166_p9), %s1349_s19, 3  ;;  %s1250_s20 = scalar_lea.hbm (!%p166_p9), %s1631_s4, 16 }
  0x13   : > { %s192_s27 = scalar_select %p191_p10, %s1349_s19, 1  ;;  %v214_v1 = vld [vmem:[%s1630_s3] sm:$0xff]  ;;  %v1093_v6 = vld [vmem:[%s1630_s3 + $0x8] sm:$0xff]  ;;  %v1108_v11 = vld [vmem:[%s1630_s3 + $0x10] sm:$0xff]  ;;  %v209_v41 = vlaneseq  ;;  %vm257_vm3 = vcmask 1043456   ;;  %vm250_vm4 = vcmask 31744  }
  0x14   : > { %v1117_v16 = vld [vmem:[%s1630_s3 + $0x18] sm:$0xff]  ;;  %v1134_v23 = vld [vmem:[%s1630_s3 + $0x28] sm:$0xff]  ;;  %v1143_v28 = vld [vmem:[%s1630_s3 + $0x30] sm:$0xff]  ;;  %s1022_s7 = scalar_lea.hbm %s1631_s4, %s1176_s30 }
  0x15   : > { %s1175_s28 = sshll.u32 %s192_s27, 3  ;;  %v1152_v33 = vld [vmem:[%s1630_s3 + $0x38] sm:$0xff]  ;;  %v1445_v44 = vand.u32 127, %v209_v41  ;;  %v1094_v59 = vld [vmem:[%s1628_s1 + $0x10] sm:$0xff]  ;;  %v223_v62 = vld [vmem:[%s1628_s1] sm:$0xff] }
  0x16   : > { %s195_s5 = scalar_lea.vmem %s1627_s0, %s1175_s28  ;;  %v1095_v56 = vld [vmem:[%s1628_s1 + $0x18] sm:$0xf]  ;;  %v1109_v63 = vld [vmem:[%s1628_s1 + $0x20] sm:$0xff]  ;;  %s188_s28 = sand.u32 1, %s1284_s16  }
  0x17   : > { %v1381_v0 = vld [vmem:[%s195_s5] sm:$0xff]  ;;  %vm211_vm0 = vcmp.lt.s32.totalorder %v1445_v44, 17  ;;  %vm234_vm1 = vcmp.lt.s32.totalorder %v1445_v44, 16  ;;  %vm377_vm2 = vcmp.lt.s32.totalorder %v1445_v44, 15  ;;  %vm464_vm5 = vcmp.lt.s32.totalorder %v1445_v44, 1  ;;  %s1011_s19 = scalar_lea.sflag [#allocation3], %s188_s28 }
  0x18   : > { %200 = vst [vmem:[#allocation1] ss:$2 sm:$0xff] %v1381_v0  ;;  %vm617_vm6 = vcmp.lt.s32.totalorder %v1445_v44, 127  ;;  %vm704_vm7 = vcmp.lt.s32.totalorder %v1445_v44, 113  ;;  %vm791_vm8 = vcmp.lt.s32.totalorder %v1445_v44, 112  ;;  %vm878_vm9 = vcmp.lt.s32.totalorder %v1445_v44, 111 }
  0x19   : > { %v197_v44 = vld [vmem:[%s1629_s2 + $0x8] sm:$0xf] }
  0x1f   : > { %v201_v2 = vld.sshfl [vmem:[#allocation1] sm:$0xff pattern:$0x75316420]  ;;  %v202_v3 = vld.sshfl [vmem:[#allocation1 + $0x8] sm:$0xff pattern:$0x75316420] }
  0x20   : > { %216 = vst [vmem:[#allocation1] ss:$2 sm:$0xff] %v214_v1  ;;  %205 = vrot.lane.b32.xlu1 %v201_v2, %s1294_s8  ;;  %v1110_v1 = vld [vmem:[%s1628_s1 + $0x28] sm:$0xf] }
  0x27   : > { %v1387_v4 = vld.sshfl [vmem:[#allocation1] sm:$0xff pattern:$0x75316420]  ;;  %v1389_v5 = vld.sshfl [vmem:[#allocation1 + $0x8] sm:$0xff pattern:$0x75316420] }
  0x28   : > { %225 = vst [vmem:[#allocation1] ss:$2 sm:$0xff] %v1381_v0  ;;  %207 = vrot.lane.b32.xlu1 %v202_v3, %s1294_s8 }
  0x2f   : > { %v226_v7 = vld.sshfl [vmem:[#allocation1] sm:$0xff pattern:$0x75316420]  ;;  %v227_v8 = vld.sshfl [vmem:[#allocation1 + $0x8] sm:$0xff pattern:$0x75316420] }
  0x30   : > { %230 = vrot.lane.b32.xlu0 %v226_v7, %s1295_s11  ;;  %240 = vst [vmem:[#allocation1] ss:$2 sm:$0xff] %v1093_v6 }
  0x37   : > { %v1395_v9 = vld.sshfl [vmem:[#allocation1] sm:$0xff pattern:$0x75316420]  ;;  %v1397_v10 = vld.sshfl [vmem:[#allocation1 + $0x8] sm:$0xff pattern:$0x75316420] }
  0x38   : > { %232 = vrot.lane.b32.xlu0 %v227_v8, %s1295_s11  ;;  %368 = vst [vmem:[#allocation1] ss:$2 sm:$0xff] %v1381_v0  ;;  %v1118_v8 = vld [vmem:[%s1628_s1 + $0x30] sm:$0xff] }
  0x3f   : > { %v369_v12 = vld.sshfl [vmem:[#allocation1] sm:$0xff pattern:$0x75316420]  ;;  %v370_v13 = vld.sshfl [vmem:[#allocation1 + $0x8] sm:$0xff pattern:$0x75316420] }
  0x40   : > { %383 = vst [vmem:[#allocation1] ss:$2 sm:$0xff] %v1108_v11  ;;  %373 = vrot.lane.b32.xlu2 %v369_v12, %s1296_s14  ;;  %v1127_v11 = vld [vmem:[%s1628_s1 + $0x48] sm:$0xf] }
  0x47   : > { %v1403_v14 = vld.sshfl [vmem:[#allocation1] sm:$0xff pattern:$0x75316420]  ;;  %v1405_v15 = vld.sshfl [vmem:[#allocation1 + $0x8] sm:$0xff pattern:$0x75316420] }
  0x48   : > { %455 = vst [vmem:[#allocation1] ss:$2 sm:$0xff] %v1381_v0  ;;  %375 = vrot.lane.b32.xlu2 %v370_v13, %s1296_s14 }
  0x4f   : > { %v457_v17 = vld.sshfl [vmem:[#allocation1 + $0x8] sm:$0xff pattern:$0x75316420]  ;;  %v456_v18 = vld.sshfl [vmem:[#allocation1] sm:$0xff pattern:$0x75316420] }
  0x50   : > { %462 = vrot.lane.b32.xlu1 %v457_v17, %s1297_s23  ;;  %460 = vrot.lane.b32.xlu0 %v456_v18, %s1297_s23  ;;  %470 = vst [vmem:[#allocation1] ss:$2 sm:$0xff] %v1117_v16  ;;  %v1135_v18 = vld [vmem:[%s1628_s1 + $0x50] sm:$0xff] }
  0x57   : > { %v1411_v19 = vld.sshfl [vmem:[#allocation1] sm:$0xff pattern:$0x75316420]  ;;  %v1413_v20 = vld.sshfl [vmem:[#allocation1 + $0x8] sm:$0xff pattern:$0x75316420] }
  0x58   : > { %545 = vst [vmem:[#allocation1] ss:$2 sm:$0xff] %v1381_v0 }
  0x5f   : > { %v1416_v21 = vld.sshfl [vmem:[#allocation1] sm:$0xff pattern:$0x75316420]  ;;  %v1418_v22 = vld.sshfl [vmem:[#allocation1 + $0x8] sm:$0xff pattern:$0x75316420] }
  0x60   : > { %608 = vst [vmem:[#allocation1] ss:$2 sm:$0xff] %v1381_v0 }
  0x67   : > { %v610_v24 = vld.sshfl [vmem:[#allocation1 + $0x8] sm:$0xff pattern:$0x75316420]  ;;  %v609_v25 = vld.sshfl [vmem:[#allocation1] sm:$0xff pattern:$0x75316420] }
  0x68   : > { %615 = vrot.lane.b32.xlu0 %v610_v24, %s1298_s29  ;;  %623 = vst [vmem:[#allocation1] ss:$2 sm:$0xff] %v1134_v23  ;;  %613 = vrot.lane.b32.xlu2 %v609_v25, %s1298_s29  ;;  %s1090_s29 = sshll.u32 %s188_s28, 3 }
  0x69   : > { %s190_s8 = scalar_lea.vmem [#allocation2], %s1090_s29 }
  0x6f   : > { %v1424_v26 = vld.sshfl [vmem:[#allocation1] sm:$0xff pattern:$0x75316420]  ;;  %v1426_v27 = vld.sshfl [vmem:[#allocation1 + $0x8] sm:$0xff pattern:$0x75316420] }
  0x70   : > { %695 = vst [vmem:[#allocation1] ss:$2 sm:$0xff] %v1381_v0 }
  0x77   : > { %v696_v29 = vld.sshfl [vmem:[#allocation1] sm:$0xff pattern:$0x75316420]  ;;  %v697_v30 = vld.sshfl [vmem:[#allocation1 + $0x8] sm:$0xff pattern:$0x75316420] }
  0x78   : > { %700 = vrot.lane.b32.xlu1 %v696_v29, %s1299_s6  ;;  %710 = vst [vmem:[#allocation1] ss:$2 sm:$0xff] %v1143_v28  ;;  %702 = vrot.lane.b32.xlu2 %v697_v30, %s1299_s6  ;;  %v1145_v28 = vld [vmem:[%s1628_s1 + $0x68] sm:$0xf]  ;;  %v196_v29 = vld [vmem:[%s1629_s2] sm:$0xff]  ;;  %v1302_v30 = vmov 0  }
  0x79   : > { %1227 = vset.pattern.permute.xlu1 %v1302_v30  ;;  %1228 = vset.pattern.permute.xlu2 %v1302_v30 }
  0x7a   : > { %1229 = vset.pattern.permute.xlu0 %v1302_v30 }
  0x7f   : > { %v1432_v31 = vld.sshfl [vmem:[#allocation1] sm:$0xff pattern:$0x75316420]  ;;  %v1434_v32 = vld.sshfl [vmem:[#allocation1 + $0x8] sm:$0xff pattern:$0x75316420] }
  0x80   : > { %782 = vst [vmem:[#allocation1] ss:$2 sm:$0xff] %v1381_v0 }
  0x87   : > { %v784_v34 = vld.sshfl [vmem:[#allocation1 + $0x8] sm:$0xff pattern:$0x75316420]  ;;  %v783_v35 = vld.sshfl [vmem:[#allocation1] sm:$0xff pattern:$0x75316420] }
  0x88   : > { %789 = vrot.lane.b32.xlu1 %v784_v34, %s1300_s9  ;;  %787 = vrot.lane.b32.xlu0 %v783_v35, %s1300_s9  ;;  %797 = vst [vmem:[#allocation1] ss:$2 sm:$0xff] %v1152_v33  ;;  %s1024_s9 = sshll.u32 %s190_s8, 4  ;;  %s1025_s9 = int_to_ptr.vmem [resolvable:$true] %s1024_s9 }
  0x8f   : > { %v1440_v36 = vld.sshfl [vmem:[#allocation1] sm:$0xff pattern:$0x75316420]  ;;  %v1442_v37 = vld.sshfl [vmem:[#allocation1 + $0x8] sm:$0xff pattern:$0x75316420] }
  0x90   : > { %869 = vst [vmem:[#allocation1] ss:$2 sm:$0xff] %v1381_v0  ;;  %v224_v0 = vld [vmem:[%s1628_s1 + $0x8] sm:$0xf]  ;;  %958 = vperm.xlu1 %1227, %v196_v29  }
  0x92   : > { %v206_v40 = vpop.permute.xlu1 %205 }
  0x97   : > { %v871_v38 = vld.sshfl [vmem:[#allocation1 + $0x8] sm:$0xff pattern:$0x75316420]  ;;  %v870_v39 = vld.sshfl [vmem:[#allocation1] sm:$0xff pattern:$0x75316420] }
  0x98   : > { %876 = vrot.lane.b32.xlu0 %v871_v38, %s1301_s10  ;;  %874 = vrot.lane.b32.xlu2 %v870_v39, %s1301_s10  ;;  %v1153_v39 = vld [vmem:[%s1628_s1 + $0x70] sm:$0xff]  ;;  %s1026_s10 = sshll.u32 %s1022_s7, 4  ;;  %s1027_s10 = int_to_ptr.hbm [resolvable:$true] %s1026_s10 }
  0x99   : > { %s1244_s11 = sshra.s32 %s1027_s10, 4  ;;  %s1245_s11 = int_to_ptr.hbm [resolvable:$true] %s1244_s11 }
  0x9a   : > { %v374_v42 = vpop.permute.xlu2 %373  ;;  %v208_v45 = vpop.permute.xlu1 %207  ;;  %s1246_s12 = scalar_lea.hbm %s1245_s11, 8  ;;  %p1251_p0 = scmp.lt.s32.totalorder %s1245_s11, %s1631_s4 }
  0x9b   : > { %v212_v46 = vsel %vm211_vm0, %v206_v40, %v208_v45  ;;  %v213_v47 = vsel %vm211_vm0, %v208_v45, %v206_v40  ;;  %v1154_v40 = vld [vmem:[%s1628_s1 + $0x78] sm:$0xf]  ;;  %p1247_p11 = scmp.ne.s32.totalorder %s1245_s11, %s1246_s12  ;;  %p1252_p1 = scmp.lt.s32.totalorder %s1250_s20, %s1246_s12 }
  0x9c   : > { %v221_v52 = vmul.f32 %v1387_v4, %v213_v47  ;;  %v222_v53 = vmul.f32 %v1389_v5, %v212_v46 }
  0x9d   : > { %p1248_p12 = pnand %p1247_p11, %p1366_p5  ;;  %p1253_p2 = por %p1252_p1, %p1251_p0 }
  0x9f   : > { %p1249_p13 = pneg %p1248_p12 }
  0xa0   : > { %963 = vperm.xlu2 %1228, %v197_v44  }
  0xa1   : > { %p1254_p3 = pnand %p1253_p2, %p1249_p13 }
  0xa2   : > { %v231_v43 = vpop.permute.xlu0 %230  ;;  %v376_v48 = vpop.permute.xlu2 %375 }
  0xa3   : > { %v378_v57 = vsel %vm377_vm2, %v374_v42, %v376_v48  ;;  %v379_v58 = vsel %vm377_vm2, %v376_v48, %v374_v42  ;;  %v1162_v48 = vld [vmem:[%s1628_s1 + $0x80] sm:$0xff] }
  0xa4   : > { %v388_v60 = vmul.f32 %v1403_v14, %v379_v58  ;;  %v389_v61 = vmul.f32 %v1405_v15, %v378_v57 }
  0xaa   : > { %v233_v49 = vpop.permute.xlu0 %232 }
  0xab   : > { %v235_v50 = vsel %vm234_vm1, %v231_v43, %v233_v49  ;;  %v236_v51 = vsel %vm234_vm1, %v233_v49, %v231_v43  ;;  %v1163_v49 = vld [vmem:[%s1628_s1 + $0x88] sm:$0xf] }
  0xac   : > { %v246_v54 = vmul.f32 %v1397_v10, %v235_v50  ;;  %v245_v55 = vmul.f32 %v1395_v9, %v236_v51  ;;  %v1126_v9 = vld [vmem:[%s1628_s1 + $0x40] sm:$0xff]  ;;  %v1119_v10 = vld [vmem:[%s1628_s1 + $0x38] sm:$0xf] }
  0xae   : > { %1178 = vmatpush.msk.msra.mxu3 %vm257_vm3, %v246_v54  ;;  %1177 = vmatpush.msk.msra.mxu2 %vm257_vm3, %v245_v55 }
  0xaf   : > { %1101 = vmatmul.msk.f32.vlgmr.msra.gmra.mxu3 %vm250_vm4, %v1095_v56  ;;  %1098 = vmatmul.msk.f32.vlgmr.msra.gmra.mxu2 %vm250_vm4, %v1095_v56 }
  0xb0   : > { %1105 = vmatpush.msk.msrb.mxu3 %vm257_vm3, %v222_v53  ;;  %1102 = vmatpush.msk.msrb.mxu2 %vm257_vm3, %v221_v52 }
  0xb1   : > { %1096 = vmatpush.msk.msra.mxu0 %vm257_vm3, %v245_v55  ;;  %1099 = vmatpush.msk.msra.mxu1 %vm257_vm3, %v246_v54 }
  0xb2   : > { %1097 = vmatmul.msk.f32.vlgmr.msra.gmra.mxu0 %vm250_vm4, %v1094_v59  ;;  %1100 = vmatmul.msk.f32.vlgmr.msra.gmra.mxu1 %vm250_vm4, %v1094_v59 }
  0xb3   : > { %1111 = vmatpush.msk.msrb.mxu0 %vm257_vm3, %v388_v60  ;;  %1114 = vmatpush.msk.msrb.mxu1 %vm257_vm3, %v389_v61 }
  0xb5   : > { %1128 = vmatpush.msk.msra.mxu0 %vm257_vm3, %v1416_v21  ;;  %1131 = vmatpush.msk.msra.mxu1 %vm257_vm3, %v1418_v22 }
  0xb7   : > { %1106 = vmatmul.msk.f32.vlgmr.msrb.gmra.mxu3 %vm250_vm4, %v223_v62  ;;  %1103 = vmatmul.msk.f32.vlgmr.msrb.gmra.mxu2 %vm250_vm4, %v223_v62 }
  0xba   : > { %1112 = vmatmul.msk.f32.vlgmr.msrb.gmra.mxu0 %vm250_vm4, %v1109_v63  ;;  %1115 = vmatmul.msk.f32.vlgmr.msrb.gmra.mxu1 %vm250_vm4, %v1109_v63 }
  0xbf   : > { %1107 = vmatmul.msk.f32.gmra.mxu3 %vm250_vm4, %v224_v0  ;;  %1104 = vmatmul.msk.f32.gmra.mxu2 %vm250_vm4, %v224_v0 }
  0xc2   : > { %v463_v2 = vpop.permute.xlu1 %462  ;;  %v461_v3 = vpop.permute.xlu0 %460  ;;  %1113 = vmatmul.msk.f32.gmra.mxu0 %vm250_vm4, %v1110_v1  ;;  %1116 = vmatmul.msk.f32.gmra.mxu1 %vm250_vm4, %v1110_v1 }
  0xc3   : > { %v465_v4 = vsel %vm464_vm5, %v461_v3, %v463_v2  ;;  %v466_v5 = vsel %vm464_vm5, %v463_v2, %v461_v3  ;;  %v614_v12 = vpop.permute.xlu2 %613 }
  0xc4   : > { %v475_v6 = vmul.f32 %v1411_v19, %v466_v5  ;;  %v476_v7 = vmul.f32 %v1413_v20, %v465_v4  ;;  %v1161_v19 = vld [vmem:[%s1630_s3 + $0x40] sm:$0xff]  ;;  %v1136_v20 = vld [vmem:[%s1628_s1 + $0x58] sm:$0xf] }
  0xc5   : > { %884 = vst [vmem:[#allocation1] ss:$2 sm:$0xff] %v1161_v19 }
  0xc6   : > { %1123 = vmatpush.msk.msra.mxu3 %vm257_vm3, %v476_v7  ;;  %1120 = vmatpush.msk.msra.mxu2 %vm257_vm3, %v475_v6 }
  0xc7   : > { %1124 = vmatmul.msk.f32.vlgmr.msra.gmra.mxu3 %vm250_vm4, %v1118_v8  ;;  %1121 = vmatmul.msk.f32.vlgmr.msra.gmra.mxu2 %vm250_vm4, %v1118_v8 }
  0xca   : > { %1129 = vmatmul.msk.f32.vlgmr.msra.gmra.mxu0 %vm250_vm4, %v1126_v9  ;;  %1132 = vmatmul.msk.f32.vlgmr.msra.gmra.mxu1 %vm250_vm4, %v1126_v9 }
  0xcc   : > { %v886_v41 = vld.sshfl [vmem:[#allocation1 + $0x8] sm:$0xff pattern:$0x75316420] }
  0xcf   : > { %1125 = vmatmul.msk.f32.gmra.mxu3 %vm250_vm4, %v1119_v10  ;;  %1122 = vmatmul.msk.f32.gmra.mxu2 %vm250_vm4, %v1119_v10 }
  0xd2   : > { %1130 = vmatmul.msk.f32.gmra.mxu0 %vm250_vm4, %v1127_v11  ;;  %1133 = vmatmul.msk.f32.gmra.mxu1 %vm250_vm4, %v1127_v11  ;;  %v703_v21 = vpop.permute.xlu2 %702 }
  0xda   : > { %v616_v13 = vpop.permute.xlu0 %615 }
  0xdb   : > { %v618_v14 = vsel %vm617_vm6, %v614_v12, %v616_v13  ;;  %v619_v15 = vsel %vm617_vm6, %v616_v13, %v614_v12 }
  0xdc   : > { %v628_v16 = vmul.f32 %v1424_v26, %v618_v14  ;;  %v629_v17 = vmul.f32 %v1426_v27, %v619_v15  ;;  %v1144_v27 = vld [vmem:[%s1628_s1 + $0x60] sm:$0xff] }
  0xde   : > { %1140 = vmatpush.msk.msrb.mxu3 %vm257_vm3, %v629_v17  ;;  %1137 = vmatpush.msk.msrb.mxu2 %vm257_vm3, %v628_v16 }
  0xdf   : > { %1141 = vmatmul.msk.f32.vlgmr.msrb.gmra.mxu3 %vm250_vm4, %v1135_v18  ;;  %1138 = vmatmul.msk.f32.vlgmr.msrb.gmra.mxu2 %vm250_vm4, %v1135_v18 }
  0xe7   : > { %1142 = vmatmul.msk.f32.gmra.mxu3 %vm250_vm4, %v1136_v20  ;;  %1139 = vmatmul.msk.f32.gmra.mxu2 %vm250_vm4, %v1136_v20 }
  0xea   : > { %v701_v22 = vpop.permute.xlu1 %700 }
  0xeb   : > { %v705_v23 = vsel %vm704_vm7, %v701_v22, %v703_v21  ;;  %v706_v24 = vsel %vm704_vm7, %v703_v21, %v701_v22 }
  0xec   : > { %v715_v25 = vmul.f32 %v1432_v31, %v705_v23  ;;  %v716_v26 = vmul.f32 %v1434_v32, %v706_v24 }
  0xee   : > { %1146 = vmatpush.msk.msrb.mxu0 %vm257_vm3, %v715_v25  ;;  %1149 = vmatpush.msk.msrb.mxu1 %vm257_vm3, %v716_v26 }
  0xef   : > { %1147 = vmatmul.msk.f32.vlgmr.msrb.gmra.mxu0 %vm250_vm4, %v1144_v27  ;;  %1150 = vmatmul.msk.f32.vlgmr.msrb.gmra.mxu1 %vm250_vm4, %v1144_v27 }
  0xf7   : > { %1148 = vmatmul.msk.f32.gmra.mxu0 %vm250_vm4, %v1145_v28  ;;  %1151 = vmatmul.msk.f32.gmra.mxu1 %vm250_vm4, %v1145_v28 }
  0xfa   : > { %v790_v31 = vpop.permute.xlu1 %789  ;;  %v788_v32 = vpop.permute.xlu0 %787 }
  0xfb   : > { %v792_v33 = vsel %vm791_vm8, %v788_v32, %v790_v31  ;;  %v793_v34 = vsel %vm791_vm8, %v790_v31, %v788_v32 }
  0xfc   : > { %v802_v35 = vmul.f32 %v1440_v36, %v792_v33  ;;  %v803_v38 = vmul.f32 %v1442_v37, %v793_v34  ;;  %v875_v36 = vpop.permute.xlu2 %874  ;;  %v885_v37 = vld.sshfl [vmem:[#allocation1] sm:$0xff pattern:$0x75316420] }
  0xfe   : > { %1155 = vmatpush.msk.msra.mxu2 %vm257_vm3, %v802_v35  ;;  %1158 = vmatpush.msk.msra.mxu3 %vm257_vm3, %v803_v38 }
  0xff   : > { %1156 = vmatmul.msk.f32.vlgmr.msra.gmra.mxu2 %vm250_vm4, %v1153_v39  ;;  %1159 = vmatmul.msk.f32.vlgmr.msra.gmra.mxu3 %vm250_vm4, %v1153_v39 }
 0x102   : > { %v959_v38 = vpop.permute.xlu1 %958 }
 0x107   : > { %1157 = vmatmul.msk.f32.gmra.mxu2 %vm250_vm4, %v1154_v40  ;;  %1160 = vmatmul.msk.f32.gmra.mxu3 %vm250_vm4, %v1154_v40 }
 0x10a   : > { %v877_v42 = vpop.permute.xlu0 %876 }
 0x10b   : > { %v879_v43 = vsel %vm878_vm9, %v875_v36, %v877_v42  ;;  %v880_v45 = vsel %vm878_vm9, %v877_v42, %v875_v36 }
 0x10c   : > { %v889_v46 = vmul.f32 %v885_v37, %v879_v43  ;;  %v890_v47 = vmul.f32 %v886_v41, %v880_v45 }
 0x10e   : > { %1164 = vmatpush.msk.msra.mxu0 %vm257_vm3, %v889_v46  ;;  %1167 = vmatpush.msk.msra.mxu1 %vm257_vm3, %v890_v47 }
 0x10f   : > { %1165 = vmatmul.msk.f32.vlgmr.msra.gmra.mxu0 %vm250_vm4, %v1162_v48  ;;  %1168 = vmatmul.msk.f32.vlgmr.msra.gmra.mxu1 %vm250_vm4, %v1162_v48 }
 0x117   : > { %1166 = vmatmul.msk.f32.gmra.mxu0 %vm250_vm4, %v1163_v49  ;;  %1169 = vmatmul.msk.f32.gmra.mxu1 %vm250_vm4, %v1163_v49 }
 0x12f   : > { %v281_v52 = vpop.f32.mrf.mxu0  ;;  %v304_v53 = vpop.f32.mrf.mxu1 }
 0x132   : > { %v307_v50 = vpop.f32.mrf.mxu3  ;;  %v284_v51 = vpop.f32.mrf.mxu2 }
 0x137   : > { %v422_v56 = vpop.f32.mrf.mxu0  ;;  %v445_v57 = vpop.f32.mrf.mxu1 }
 0x13a   : > { %v362_v54 = vpop.f32.mrf.mxu3  ;;  %v339_v55 = vpop.f32.mrf.mxu2 }
 0x13b   : > { %v340_v8 = vadd.f32 %v339_v55, %v281_v52  ;;  %v363_v9 = vadd.f32 %v362_v54, %v304_v53  ;;  %v964_v54 = vpop.permute.xlu2 %963 }
 0x13d   : > { %v451_v12 = vadd.f32 %v422_v56, %v340_v8  ;;  %v452_v13 = vadd.f32 %v445_v57, %v363_v9 }
 0x13f   : > { %v425_v60 = vpop.f32.mrf.mxu0  ;;  %v448_v61 = vpop.f32.mrf.mxu1 }
 0x142   : > { %v365_v58 = vpop.f32.mrf.mxu3  ;;  %v342_v59 = vpop.f32.mrf.mxu2 }
 0x143   : > { %v366_v16 = vadd.f32 %v365_v58, %v307_v50  ;;  %v343_v17 = vadd.f32 %v342_v59, %v284_v51 }
 0x145   : > { %v453_v22 = vadd.f32 %v425_v60, %v343_v17  ;;  %v454_v23 = vadd.f32 %v448_v61, %v366_v16 }
 0x147   : > { %v575_v0 = vpop.f32.mrf.mxu0  ;;  %v598_v1 = vpop.f32.mrf.mxu1 }
 0x14a   : > { %v532_v62 = vpop.f32.mrf.mxu3  ;;  %v509_v63 = vpop.f32.mrf.mxu2 }
 0x14b   : > { %v539_v18 = vadd.f32 %v532_v62, %v452_v13  ;;  %v538_v19 = vadd.f32 %v509_v63, %v451_v12 }
 0x14d   : > { %v604_v24 = vadd.f32 %v575_v0, %v538_v19  ;;  %v605_v25 = vadd.f32 %v598_v1, %v539_v18 }
 0x14f   : > { %v578_v4 = vpop.f32.mrf.mxu0  ;;  %v601_v5 = vpop.f32.mrf.mxu1 }
 0x152   : > { %v535_v2 = vpop.f32.mrf.mxu3  ;;  %v512_v3 = vpop.f32.mrf.mxu2 }
 0x153   : > { %v541_v30 = vadd.f32 %v535_v2, %v454_v23  ;;  %v540_v31 = vadd.f32 %v512_v3, %v453_v22 }
 0x155   : > { %v606_v36 = vadd.f32 %v578_v4, %v540_v31  ;;  %v607_v37 = vadd.f32 %v601_v5, %v541_v30 }
 0x162   : > { %v685_v6 = vpop.f32.mrf.mxu3  ;;  %v662_v7 = vpop.f32.mrf.mxu2 }
 0x163   : > { %v692_v28 = vadd.f32 %v685_v6, %v605_v25  ;;  %v691_v29 = vadd.f32 %v662_v7, %v604_v24 }
 0x16a   : > { %v688_v14 = vpop.f32.mrf.mxu3  ;;  %v665_v15 = vpop.f32.mrf.mxu2 }
 0x16b   : > { %v694_v43 = vadd.f32 %v688_v14, %v607_v37  ;;  %v693_v45 = vadd.f32 %v665_v15, %v606_v36 }
 0x16c   : > { %v749_v10 = vpop.f32.mrf.mxu0  ;;  %v772_v11 = vpop.f32.mrf.mxu1 }
 0x16d   : > { %v778_v32 = vadd.f32 %v749_v10, %v691_v29  ;;  %v779_v33 = vadd.f32 %v772_v11, %v692_v28 }
 0x174   : > { %v752_v20 = vpop.f32.mrf.mxu0  ;;  %v775_v21 = vpop.f32.mrf.mxu1 }
 0x175   : > { %v780_v44 = vadd.f32 %v752_v20, %v693_v45  ;;  %v781_v49 = vadd.f32 %v775_v21, %v694_v43 }
 0x182   : > { %v836_v26 = vpop.f32.mrf.mxu2  ;;  %v859_v27 = vpop.f32.mrf.mxu3 }
 0x183   : > { %v865_v34 = vadd.f32 %v836_v26, %v778_v32  ;;  %v866_v35 = vadd.f32 %v859_v27, %v779_v33 }
 0x18a   : > { %v839_v47 = vpop.f32.mrf.mxu2  ;;  %v862_v48 = vpop.f32.mrf.mxu3 }
 0x18b   : > { %v867_v51 = vadd.f32 %v839_v47, %v780_v44  ;;  %v868_v52 = vadd.f32 %v862_v48, %v781_v49 }
 0x18c   : > { %v923_v39 = vpop.f32.mrf.mxu0  ;;  %v946_v40 = vpop.f32.mrf.mxu1 }
 0x18d   : > { %v952_v41 = vadd.f32 %v923_v39, %v865_v34  ;;  %v953_v42 = vadd.f32 %v946_v40, %v866_v35 }
 0x18f   : > { %v967_v46 = vadd.f32 %v959_v38, %v953_v42  ;;  %v966_v50 = vadd.f32 %v959_v38, %v952_v41 }
 0x191   : > { %v977_v53 = vrot.slane %v967_v46, 4  ;;  %v976_v57 = vrot.slane %v966_v50, 4  ;;  %v971_v63 = vadd.f32 %v967_v46, %v967_v46  ;;  %v970_v3 = vadd.f32 %v966_v50, %v966_v50 }
 0x193   : > { %v981_v60 = vadd.f32 %v977_v53, %v967_v46  ;;  %v980_v0 = vadd.f32 %v976_v57, %v966_v50  ;;  %v973_v7 = vmax.f32 %v971_v63, 0.0  ;;  %v972_v11 = vmax.f32 %v970_v3, 0.0 }
 0x194   : > { %v926_v55 = vpop.f32.mrf.mxu0  ;;  %v949_v56 = vpop.f32.mrf.mxu1 }
 0x195   : > { %v954_v58 = vadd.f32 %v926_v55, %v867_v51  ;;  %v955_v59 = vadd.f32 %v949_v56, %v868_v52  ;;  %v983_v4 = vmax.f32 %v981_v60, 0.0  ;;  %v982_v8 = vmax.f32 %v980_v0, 0.0 }
 0x197   : > { %v968_v61 = vadd.f32 %v964_v54, %v954_v58  ;;  %v969_v62 = vadd.f32 %v964_v54, %v955_v59  ;;  %v985_v12 = vadd.f32 %v983_v4, %v973_v7  ;;  %v984_v15 = vadd.f32 %v982_v8, %v972_v11 }
 0x199   : > { %v988_v1 = vrot.slane %v968_v61, 4  ;;  %v989_v2 = vrot.slane %v969_v62, 4 }
 0x19b   : > { %v992_v5 = vadd.f32 %v988_v1, %v966_v50  ;;  %v993_v6 = vadd.f32 %v989_v2, %v967_v46 }
 0x19d   : > { %v994_v9 = vmax.f32 %v992_v5, 0.0  ;;  %v995_v10 = vmax.f32 %v993_v6, 0.0 }
 0x19f   : > { %v998_v13 = vrot.slane %v994_v9, 4  ;;  %v999_v14 = vrot.slane %v995_v10, 4 }
 0x1a1   : > { %v1003_v16 = vadd.f32 %v999_v14, %v985_v12  ;;  %v1002_v17 = vadd.f32 %v998_v13, %v984_v15 }
 0x1a3   : > { %v1006_v18 = vrot.slane %v1003_v16, 4 }
 0x1a5   : > { %v1007_v19 = vsel %vm257_vm3, %v1002_v17, %v1006_v18 }
 0x1a6   : > { %1009 = vst [vmem:[%s190_s8] sm:$0xff] %v1007_v19 }
 0x1a7   : > { %1257 = shalt.err (!%p1254_p3)
}
 0x1a8   : > { %1179 = dma.vmem_to_hbm [thread:$0]  (%p1366_p5), %s1025_s9, 128, %s1027_s10, %s1011_s19  }
 0x1a9 PF: > { %p1185_p4 = scmp.ge.s32.totalorder %s1292_s18, 2  ;;  %s1038_s27 = sand.u32 1, %s1280_s15  }
 0x1aa   : > { %s1039_s28 = scalar_lea.sflag [#allocation3], %s1038_s27 }
 0x1ab   : > { %p1182_p7 = pnand %p1185_p4, %p1370_p6 }
 0x1ad   : > { %p1183_p8 = pneg %p1182_p7 }
 0x1af   : > { %1275 = dma.done.wait (%p1183_p8), %s1039_s28, 128  }
 0x1b0   : > { %1277 = vsyncadd (%p1183_p8), %s1039_s28, 4294967168  ;;  %p14_p9 = scmp.ge.s32.totalorder %s1353_s21, 4   ;;  %s1634_s15 = smov %s1284_s16 }
 0x1b1   : > { %s1635_s16 = smov %s1288_s17  ;;  %s1636_s17 = smov %s1364_s24 }
 0x1b2   : > { %s1637_s18 = smov %s1353_s21  ;;  %16 = sbr.rel (!%p14_p9) target bundleno = 3 (0x3), region = 86 }
 0x1b7   :  { %1045 = vsyncpa [#allocation3], 1 }
 0x1b8   :  { %1047 = vsyncpa [#allocation3 + $0x1], 1 }

</bundles_post_ra>
